<compile_context>
chip_gen: v7x
topology: tpu7x:2x2x1
jax: 0.10.0
libtpu: 0.0.40
codegen_flags: <defaults>
</compile_context>

<pallas_src>
import jax
import jax.numpy as jnp
from jax import lax
from jax.experimental import pallas as pl
from jax.experimental.pallas import tpu as pltpu


def _round_up(n: int, m: int) -> int:
    return ((n + m - 1) // m) * m


def _sublane(dtype) -> int:
    itemsize = jnp.dtype(dtype).itemsize
    if itemsize >= 4:
        return 8
    if itemsize == 2:
        return 16
    return 32


def _vmem_capacity_bytes() -> int:
    try:
        return int(pltpu.get_tpu_info().vmem_capacity_bytes)
    except Exception:
        return 64 << 20  # conservative: v7x per-TC physical VMEM


def _default_tiles(vmem_cap: int):
    if vmem_cap >= (100 << 20):      # v5e / v6e: 128 MiB physical VMEM
        return 512, 1024, 512
    return 512, 512, 512             # v7x: 64 MiB per TensorCore


def _vmem_need_bytes(tm, tn, tk, in_sz, out_sz, add_residual):
    need = 2 * (tm * tk * in_sz + tk * tn * in_sz + tn * 4)   # double-buffered inputs
    if add_residual:
        need += 2 * tm * tn * in_sz
    need += 2 * tm * tn * out_sz                               # double-buffered output
    need += tm * tn * 4                                        # fp32 accumulator
    return need


def _make_kernel(add_residual: bool):
    def kernel(*refs):
        if add_residual:
            x_ref, w_ref, shift_ref, xres_ref, o_ref, acc_ref = refs
        else:
            x_ref, w_ref, shift_ref, o_ref, acc_ref = refs
            xres_ref = None

        k = pl.program_id(2)

        @pl.when(k == 0)
        def _init():
            acc_ref[...] = jnp.zeros_like(acc_ref)

        # MXU partial product for this K-slice (operands already in the matmul
        # dtype chosen by the wrapper; accumulation is always fp32).
        acc_ref[...] += jnp.dot(x_ref[...], w_ref[...],
                                preferred_element_type=jnp.float32)

        @pl.when(k == pl.num_programs(2) - 1)
        def _epilogue():
            # Folded (Linear bias + BN) shift, then ReLU. Dropout(eval) == id.
            y = acc_ref[...] + shift_ref[...]
            y = jnp.maximum(y, 0.0)
            if add_residual:
                y = y + xres_ref[...].astype(jnp.float32)
            o_ref[...] = y.astype(o_ref.dtype)

    return kernel


def fold_bn_into_linear(weight, bias, gamma, beta, running_mean, running_var,
                        eps=1e-5, dtype=None):
    """Fold inference-mode BatchNorm1d into the linear weight & bias.

    bn(x@W^T + b) = x @ (W^T * s) + (b*s + beta - mean*s),  s = gamma*rsqrt(var+eps)

    Returns (w_folded [d_in, d_out] in `dtype`, shift [d_out] fp32).
    Call once per parameter set and reuse across batches.
    """
    scale = gamma * lax.rsqrt(running_var + eps)
    w_folded = (weight * scale[:, None]).T                     # [d_in, d_out]
    if dtype is not None:
        w_folded = w_folded.astype(dtype)
    shift = (bias * scale + beta - running_mean * scale).astype(jnp.float32)
    return w_folded, shift


def mlp_residual_block_folded(x, w_folded, shift, *, matmul_dtype=None,
                              tm=None, tn=None, tk=None, allow_fallback=True):
    """Fused Linear(+folded BN) -> ReLU -> (+residual). x: [B, d_in]."""
    B, d_in = x.shape
    k_dim, d_out = w_folded.shape
    assert k_dim == d_in, "folded weight must be [d_in, d_out]"
    add_residual = (d_in == d_out)
    out_dtype = x.dtype

    # Optional low-precision MXU operands (fp32 accumulate stays in kernel).
    if matmul_dtype is not None and x.dtype != jnp.dtype(matmul_dtype):
        x = x.astype(matmul_dtype)
    if w_folded.dtype != x.dtype:
        w_folded = w_folded.astype(x.dtype)

    sub = _sublane(x.dtype)

    # Small-problem fallback: padding to (sub, 128) tiles + per-step overhead
    # would dominate — let XLA handle it.
    if allow_fallback and (d_in < 128 or d_out < 128 or B < sub):
        y = jnp.dot(x, w_folded, preferred_element_type=jnp.float32) + shift
        y = jnp.maximum(y, 0.0)
        if add_residual:
            y = y + x.astype(jnp.float32)
        return y.astype(out_dtype)

    # ---- Tile selection (per-generation defaults, clamped to problem size) --
    vmem_cap = _vmem_capacity_bytes()
    dtm, dtn, dtk = _default_tiles(vmem_cap)
    tm = tm if tm is not None else dtm
    tn = tn if tn is not None else dtn
    tk = tk if tk is not None else dtk

    tm = min(tm, _round_up(B, sub))          # sublane axis: dtype-sized tile
    tn = min(tn, _round_up(d_out, 128))      # lane axis: dense 128-wide stores
    tk = min(tk, _round_up(d_in, 128))

    # Megacore (v7x 2-TC) helper: if the parallel grid collapses to one block,
    # split M or N in two — but only when it adds no extra padding.
    mp = _round_up(B, sub)
    np_ = _round_up(d_out, 128)
    if mp <= tm and np_ <= tn:
        if np_ >= 256 and (np_ // 2) % 128 == 0:
            tn = np_ // 2
        elif mp >= 2 * sub and (mp // 2) % sub == 0:
            tm = mp // 2

    Bp = _round_up(B, tm)
    Kp = _round_up(d_in, tk)
    Np = _round_up(d_out, tn)

    x_p = x if (Bp == B and Kp == d_in) else jnp.pad(x, ((0, Bp - B), (0, Kp - d_in)))
    w_p = (w_folded if (Kp == d_in and Np == d_out)
           else jnp.pad(w_folded, ((0, Kp - d_in), (0, Np - d_out))))
    shift_p = jnp.pad(shift.astype(jnp.float32), (0, Np - d_out))[None, :]  # [1, Np]

    grid = (Bp // tm, Np // tn, Kp // tk)    # K-reduction last

    in_specs = [
        pl.BlockSpec((tm, tk), lambda i, j, k: (i, k)),        # x
        pl.BlockSpec((tk, tn), lambda i, j, k: (k, j)),        # folded weight
        pl.BlockSpec((1, tn), lambda i, j, k: (0, j)),         # folded shift
    ]
    operands = [x_p, w_p, shift_p]
    if add_residual:
        # Separate residual operand padded over the N axis; tn and tk stay
        # independently tunable.
        xres_p = (x if (Bp == B and Np == d_out)
                  else jnp.pad(x, ((0, Bp - B), (0, Np - d_out))))
        in_specs.append(pl.BlockSpec((tm, tn), lambda i, j, k: (i, j)))
        operands.append(xres_p)

    in_sz = jnp.dtype(x.dtype).itemsize
    out_sz = jnp.dtype(out_dtype).itemsize
    need = _vmem_need_bytes(tm, tn, tk, in_sz, out_sz, add_residual)
    vmem_limit = int(min(vmem_cap - (4 << 20), max(need + (8 << 20), 32 << 20)))
    vmem_limit = max(vmem_limit, need + (1 << 20))

    grid_m, grid_n = Bp // tm, Np // tn
    bytes_accessed = (Bp * Kp * in_sz * grid_n          # x re-read per N block
                      + Kp * Np * in_sz * grid_m        # weight re-read per M block
                      + Bp * Np * out_sz)               # output write
    if add_residual:
        bytes_accessed += Bp * Np * in_sz

    out_padded = pl.pallas_call(
        _make_kernel(add_residual),
        out_shape=jax.ShapeDtypeStruct((Bp, Np), out_dtype),
        grid_spec=pltpu.PrefetchScalarGridSpec(
            num_scalar_prefetch=0,
            grid=grid,
            in_specs=in_specs,
            out_specs=pl.BlockSpec((tm, tn), lambda i, j, k: (i, j)),
            scratch_shapes=[pltpu.VMEM((tm, tn), jnp.float32)],
        ),
        compiler_params=pltpu.CompilerParams(
            dimension_semantics=("parallel", "parallel", "arbitrary"),
            vmem_limit_bytes=vmem_limit),
        cost_estimate=pl.CostEstimate(
            flops=2 * B * d_in * d_out,
            transcendentals=0,
            bytes_accessed=bytes_accessed),
    )(*operands)

    return out_padded[:B, :d_out]


def mlp_residual_block(x, weight, bias, gamma, beta, running_mean, running_var,
                       eps=1e-5, *, matmul_dtype=None, **kwargs):
    """Convenience wrapper: fold BN then run the fused kernel.

    For repeated calls, prefer fold_bn_into_linear(...) once +
    mlp_residual_block_folded(...) per batch so the weight fold/transpose is
    not redone (and re-streamed through HBM) every call.
    """
    dt = matmul_dtype if matmul_dtype is not None else x.dtype
    w_folded, shift = fold_bn_into_linear(weight, bias, gamma, beta,
                                          running_mean, running_var, eps,
                                          dtype=dt)
    return mlp_residual_block_folded(x, w_folded, shift,
                                     matmul_dtype=matmul_dtype, **kwargs)


def _reference(x, weight, bias, gamma, beta, running_mean, running_var,
               eps=1e-5):
    y = x @ weight.T + bias
    y = (y - running_mean) / jnp.sqrt(running_var + eps) * gamma + beta
    y = jnp.maximum(y, 0.0)
    if x.shape[-1] == weight.shape[0]:
        y = x + y
    return y


def _make_params(key, d_in, d_out, batch):
    k1, k2, k3, k4, k5, k6, k7 = jax.random.split(key, 7)
    x = jax.random.normal(k1, (batch, d_in), dtype=jnp.float32)
    weight = jax.random.normal(k2, (d_out, d_in), dtype=jnp.float32) * 0.1
    bias = jax.random.normal(k3, (d_out,), dtype=jnp.float32) * 0.1
    gamma = 1.0 + 0.1 * jax.random.normal(k4, (d_out,), dtype=jnp.float32)
    beta = 0.1 * jax.random.normal(k5, (d_out,), dtype=jnp.float32)
    running_mean = 0.1 * jax.random.normal(k6, (d_out,), dtype=jnp.float32)
    running_var = jnp.abs(jax.random.normal(k7, (d_out,), dtype=jnp.float32)) + 0.5
    return x, weight, bias, gamma, beta, running_mean, running_var


if __name__ == "__main__":
    key = jax.random.PRNGKey(0)
    k1, k2, k3 = jax.random.split(key, 3)

    # Case 1: input_dim == output_dim -> residual path, Pallas kernel.
    B, D = 128, 256
    params = _make_params(k1, D, D, B)
    out = jax.block_until_ready(mlp_residual_block(*params, allow_fallback=False))
    ref = _reference(*params)
    assert jnp.allclose(out, ref, atol=1e-4, rtol=1e-4), "mismatch (residual case)"

    # Case 2: input_dim != output_dim, ragged shapes exercising K/N padding.
    B2, D_IN2, D_OUT2 = 96, 160, 384
    params2 = _make_params(k2, D_IN2, D_OUT2, B2)
    out2 = jax.block_until_ready(mlp_residual_block(*params2, allow_fallback=False))
    ref2 = _reference(*params2)
    assert jnp.allclose(out2, ref2, atol=1e-4, rtol=1e-4), "mismatch (no-residual case)"

    # Case 3: tiny shape -> XLA fallback path (padding/overhead would dominate).
    params3 = _make_params(k3, 32, 32, 8)
    out3 = jax.block_until_ready(mlp_residual_block(*params3))
    ref3 = _reference(*params3)
    assert jnp.allclose(out3, ref3, atol=1e-4, rtol=1e-4), "mismatch (fallback case)"

    # Case 4: bf16 MXU operands (v6e/v7x fast path), fp32 accumulate, f32 output.
    out4 = jax.block_until_ready(
        mlp_residual_block(*params, matmul_dtype=jnp.bfloat16, allow_fallback=False))
    assert jnp.allclose(out4, ref, atol=5e-2, rtol=5e-2), "mismatch (bf16 matmul case)"

    print("KERNEL_OK")
</pallas_src>

<mosaic_0001>
module attributes {stable_mosaic.version = 11 : i64} {
  func.func @kernel(%arg0: i32, %arg1: i32, %arg2: i32, %arg3: memref<128x256xf32, #tpu.memory_space<vmem>>, %arg4: memref<256x128xf32, #tpu.memory_space<vmem>>, %arg5: memref<1x128xf32, #tpu.memory_space<vmem>>, %arg6: memref<128x128xf32, #tpu.memory_space<vmem>>, %arg7: memref<128x128xf32, #tpu.memory_space<vmem>>, %arg8: memref<128x128xf32, #tpu.memory_space<vmem>>) attributes {dimension_semantics = [#tpu.dimension_semantics<parallel>, #tpu.dimension_semantics<parallel>, #tpu.dimension_semantics<arbitrary>], iteration_bounds = array<i64: 1, 2, 1>, scalar_prefetch = 0 : i64, scratch_operands = 1 : i64, tpu.core_type = #tpu.core_type<tc>, window_params = [{transform_indices = @transform_0, window_bounds = array<i64: 128, 256>}, {transform_indices = @transform_1, window_bounds = array<i64: 256, 128>}, {transform_indices = @transform_2, window_bounds = array<i64: 1, 128>}, {transform_indices = @transform_3, window_bounds = array<i64: 128, 128>}, {transform_indices = @transform_4, window_bounds = array<i64: 128, 128>}]} {
    %c0_i32 = arith.constant 0 : i32
    %0 = arith.cmpi eq, %arg2, %c0_i32 : i32
    %1 = arith.extui %0 : i1 to i32
    %c0_i32_0 = arith.constant 0 : i32
    %2 = arith.cmpi ne, %1, %c0_i32_0 : i32
    scf.if %2 {
      %cst_10 = arith.constant 0.000000e+00 : f32
      %12 = vector.broadcast %cst_10 : f32 to vector<128x128xf32>
      %c0_11 = arith.constant 0 : index
      %c0_12 = arith.constant 0 : index
      %13 = vector.load %arg8[%c0_11, %c0_12] : memref<128x128xf32, #tpu.memory_space<vmem>>, vector<128x128xf32>
      tpu.vector_store %arg8[%c0_11, %c0_12], %12 {strides = array<i32>} : memref<128x128xf32, #tpu.memory_space<vmem>>, vector<128x128xf32>,
    } else {
    }
    %c0 = arith.constant 0 : index
    %c0_1 = arith.constant 0 : index
    %3 = vector.load %arg8[%c0, %c0_1] : memref<128x128xf32, #tpu.memory_space<vmem>>, vector<128x128xf32>
    %c0_2 = arith.constant 0 : index
    %c0_3 = arith.constant 0 : index
    %4 = vector.load %arg3[%c0_2, %c0_3] : memref<128x256xf32, #tpu.memory_space<vmem>>, vector<128x256xf32>
    %c0_4 = arith.constant 0 : index
    %c0_5 = arith.constant 0 : index
    %5 = vector.load %arg4[%c0_4, %c0_5] : memref<256x128xf32, #tpu.memory_space<vmem>>, vector<256x128xf32>
    %cst = arith.constant dense<0.000000e+00> : vector<128x128xf32>
    %6 = tpu.matmul %4, %5, %cst {dimension_numbers = #tpu.dot_dimension_numbers<[1], [0], [0], [1], [0, 0, 1, 1], [], []>} : vector<128x256xf32>, vector<256x128xf32>, vector<128x128xf32> -> vector<128x128xf32>
    %7 = arith.addf %3, %6 : vector<128x128xf32>
    %c0_6 = arith.constant 0 : index
    %c0_7 = arith.constant 0 : index
    %8 = vector.load %arg8[%c0_6, %c0_7] : memref<128x128xf32, #tpu.memory_space<vmem>>, vector<128x128xf32>
    tpu.vector_store %arg8[%c0_6, %c0_7], %7 {strides = array<i32>} : memref<128x128xf32, #tpu.memory_space<vmem>>, vector<128x128xf32>,
    %c0_i32_8 = arith.constant 0 : i32
    %9 = arith.cmpi eq, %arg2, %c0_i32_8 : i32
    %10 = arith.extui %9 : i1 to i32
    %c0_i32_9 = arith.constant 0 : i32
    %11 = arith.cmpi ne, %10, %c0_i32_9 : i32
    scf.if %11 {
      %c0_10 = arith.constant 0 : index
      %c0_11 = arith.constant 0 : index
      %12 = vector.load %arg8[%c0_10, %c0_11] : memref<128x128xf32, #tpu.memory_space<vmem>>, vector<128x128xf32>
      %c0_12 = arith.constant 0 : index
      %c0_13 = arith.constant 0 : index
      %13 = vector.load %arg5[%c0_12, %c0_13] : memref<1x128xf32, #tpu.memory_space<vmem>>, vector<1x128xf32>
      %14 = vector.broadcast %13 : vector<1x128xf32> to vector<128x128xf32>
      %15 = arith.addf %12, %14 : vector<128x128xf32>
      %cst_14 = arith.constant 0.000000e+00 : f32
      %16 = vector.broadcast %cst_14 : f32 to vector<128x128xf32>
      %17 = arith.maximumf %15, %16 : vector<128x128xf32>
      %c0_15 = arith.constant 0 : index
      %c0_16 = arith.constant 0 : index
      %18 = vector.load %arg6[%c0_15, %c0_16] : memref<128x128xf32, #tpu.memory_space<vmem>>, vector<128x128xf32>
      %19 = arith.addf %17, %18 : vector<128x128xf32>
      %c0_17 = arith.constant 0 : index
      %c0_18 = arith.constant 0 : index
      %20 = vector.load %arg7[%c0_17, %c0_18] : memref<128x128xf32, #tpu.memory_space<vmem>>, vector<128x128xf32>
      tpu.vector_store %arg7[%c0_17, %c0_18], %19 {strides = array<i32>} : memref<128x128xf32, #tpu.memory_space<vmem>>, vector<128x128xf32>,
    } else {
    }
    return
  }
  func.func @transform_0(%arg0: i32, %arg1: i32, %arg2: i32) -> (i32, i32) {
    %c0_i32 = arith.constant 0 : i32
    return %arg0, %arg2 : i32, i32
  }
  func.func @transform_1(%arg0: i32, %arg1: i32, %arg2: i32) -> (i32, i32) {
    %c0_i32 = arith.constant 0 : i32
    return %arg2, %arg1 : i32, i32
  }
  func.func @transform_2(%arg0: i32, %arg1: i32, %arg2: i32) -> (i32, i32) {
    %c0_i32 = arith.constant 0 : i32
    %c0_i32_0 = arith.constant 0 : i32
    return %c0_i32, %arg1 : i32, i32
  }
  func.func @transform_3(%arg0: i32, %arg1: i32, %arg2: i32) -> (i32, i32) {
    %c0_i32 = arith.constant 0 : i32
    return %arg0, %arg1 : i32, i32
  }
  func.func @transform_4(%arg0: i32, %arg1: i32, %arg2: i32) -> (i32, i32) {
    %c0_i32 = arith.constant 0 : i32
    return %arg0, %arg1 : i32, i32
  }
}

</mosaic_0001>

<bundles_post_ra>
// kernel: tpu_custom_call.1
= control target key start
LH: loop header
LB: loop body
LE: loop exit
PB: predicated region body
PF: predicated region fallthrough
CT: control target
= control target key end

     0   :  { %9 = vsyncpa [#allocation4], 0  ;;  %s1684_s0 = inlined_call_operand.hbm [shape: f32[128,256], index: 0, kind: input, shape index: {}]   ;;  %s1685_s1 = inlined_call_operand.hbm [shape: f32[256,256], index: 1, kind: input, shape index: {}]   ;;  %s1686_s2 = inlined_call_operand.vmem [shape: f32[1,256], index: 2, kind: input, shape index: {}]   ;;  %s1687_s3 = inlined_call_operand.hbm [shape: f32[128,256], index: 3, kind: input, shape index: {}]   ;;  %s1688_s4 = inlined_call_operand.hbm [shape: f32[128,256], index: 4, kind: output, shape index: {}]  }
   0x1   :  { %10 = vsyncpa [#allocation7], 0 }
   0x2   :  { %12 = vsyncpa [#allocation7 + $0x1], 0 }
   0x3   :  { %13 = vsyncpa [#allocation5], 0 }
   0x4   :  { %15 = vsyncpa [#allocation5 + $0x1], 0  ;;  %s1308_s15 = smov 0   ;;  %s1310_s16 = smov 0  }
   0x5   :  { %s1312_s17 = smov 0   ;;  %s1314_s18 = smov 0  }
   0x6   :  { %s1316_s19 = smov 0   ;;  %s1318_s20 = smov 0  }
   0x7 LB: > { %s36_s21 = sadd.s32 1, %s1266_s19  ;;  %s77_s22 = sadd.s32 1, %s1258_s17  ;;  %s1270_s20 = sphi %s1318_s20, %s21_s20   ;;  %s1266_s19 = sphi %s1316_s19, %s1718_s19   ;;  %s1262_s18 = sphi %s1314_s18, %s1717_s18   ;;  %s1258_s17 = sphi %s1312_s17, %s1716_s17   ;;  %s1254_s16 = sphi %s1310_s16, %s1715_s16   ;;  %s1250_s15 = sphi %s1308_s15, %s1714_s15  }
   0x8   : > { %p38_p0 = scmp.ge.s32.totalorder %s36_s21, 2  ;;  %p84_p1 = scmp.ne.s32.totalorder %s1258_s17, %s1254_s16 }
   0x9   : > { %p85_p2 = scmp.eq.s32.totalorder %s1270_s20, 0  ;;  %p1037_p5 = scmp.lt.s32.totalorder %s1270_s20, 2 }
   0xa   : > { %s1720_s21 = smov (%p38_p0, %s36_s21), 0  ;;  %s215_s25 = sand.u32 1, %s1270_s20  }
   0xb   : > { %p1348_p3 = por %p85_p2, %p84_p1  ;;  %s73_s24 = ssub.s32 %s1266_s19, %s1720_s21 }
   0xc   : > { %p75_p6 = scmp.eq.s32.totalorder %s73_s24, 0  ;;  %s217_s26 = sand.u32 1, %s1258_s17  }
   0xd   : > { %s869_s28 = sshll.u32 %s217_s26, 8  ;;  %s870_s29 = sshll.u32 %s1266_s19, 7 }
   0xe   : > { %s1359_s27 = scalar_select %p75_p6, %s1258_s17, %s77_s22  }
   0xf   : > { %s1369_s6 = scalar_lea.hbm %s1685_s1, %s870_s29  ;;  %s219_s7 = scalar_lea.vmem [#allocation6], %s869_s28 }
  0x10   : > { %s228_s8 = sshll.u32 %s219_s7, 4  ;;  %p1373_p7 = pnand %p1037_p5, %p1348_p3  ;;  %s1377_s8 = int_to_ptr.vmem [resolvable:$true] %s228_s8 }
  0x11   : > { %s1379_s10 = scalar_lea.sflag [#allocation7], %s215_s25  ;;  %s1096_s11 = scalar_lea.hbm %s1369_s6, 4096 }
  0x12   : > { %p1097_p8 = scmp.ne.s32.totalorder %s1369_s6, %s1096_s11  ;;  %p1098_p9 = pneg %p1373_p7 }
  0x13   : > { %s1101_s14 = scalar_lea.hbm %s1685_s1, 8192  ;;  %p1102_p12 = scmp.lt.u32.totalorder %s1369_s6, %s1685_s1 }
  0x14   : > { %p1099_p10 = pnand %p1098_p9, %p1097_p8  ;;  %p1103_p13 = scmp.lt.u32.totalorder %s1101_s14, %s1096_s11 }
  0x15   : > { %p1105_p2 = scmp.lt.u32.totalorder %s1096_s11, %s1369_s6 }
  0x16   : > { %p1100_p11 = pneg %p1099_p10  ;;  %p1104_p0 = por %p1103_p13, %p1102_p12 }
  0x18   : > { %p1106_p3 = por %p1105_p2, %p1104_p0 }
  0x1a   : > { %p1107_p5 = pnand %p1106_p3, %p1100_p11 }
  0x1c   : > { %1110 = shalt.err (!%p1107_p5)
}
  0x1d   : > { %s1111_s24 = scalar_lea.vmem %s1377_s8, 4096  ;;  %s1272_s25 = smov [#allocation6]  }
  0x1e   : > { %p1112_p6 = scmp.ne.s32.totalorder %s1377_s8, %s1111_s24  ;;  %s1116_s28 = sshll.u32 %s1272_s25, 4  ;;  %s1117_s28 = int_to_ptr.vmem [resolvable:$false] %s1116_s28 }
  0x1f   : > { %s1118_s30 = scalar_lea.vmem %s1117_s28, 8192  ;;  %p1119_p4 = scmp.lt.s32.totalorder %s1377_s8, %s1117_s28 }
  0x20   : > { %p1114_p8 = pnand %p1112_p6, %p1098_p9  ;;  %p1120_p12 = scmp.lt.s32.totalorder %s1118_s30, %s1111_s24 }
  0x22   : > { %p1115_p10 = pneg %p1114_p8  ;;  %p1121_p13 = por %p1120_p12, %p1119_p4 }
  0x24   : > { %p1122_p0 = pnand %p1121_p13, %p1115_p10 }
  0x26   : > { %1125 = shalt.err (!%p1122_p0)
}
  0x27   : > { %s1689_s5 = smov 256   ;;  %s1691_s7 = smov 128  }
  0x28   : > { %s1275_s11 = smov 8   ;;  %s871_s12 = sshll.u32 %s217_s26, 7 }
  0x29   : > { %1028 = dma.hbm_to_vmem [thread:$0]  (!%p1373_p7), %s1369_s6, 4096, %s1377_s8, %s1379_s10, %s1689_s5, %s1691_s7, %s1275_s11  }
  0x2a   : > { %s1417_s22 = scalar_lea.hbm %s1687_s3, %s870_s29  ;;  %s248_s23 = scalar_lea.vmem [#allocation8], %s871_s12 }
  0x2b   : > { %s257_s24 = sshll.u32 %s248_s23, 4  ;;  %s1422_s25 = sadd.s32 4294967295, %s1270_s20   ;;  %s1419_s24 = int_to_ptr.vmem [resolvable:$true] %s257_s24 }
  0x2c   : > { %s865_s6 = sadd.s32 4294967294, %s1270_s20   ;;  %p90_p4 = scmp.ne.s32.totalorder %s1254_s16, %s1250_s15 }
  0x2d   : > { %p1692_p11 = scmp.eq.s32.totalorder %s1422_s25, 0  ;;  %p170_p2 = scmp.eq.s32.totalorder %s1422_s25, 1 }
  0x2e   : > { %p176_p3 = scmp.eq.s32.totalorder %s865_s6, 1  ;;  %p866_p5 = scmp.ge.s32.totalorder %s1270_s20, 1 }
  0x2f   : > { %p1432_p6 = por %p1692_p11, %p90_p4  ;;  %p1439_p8 = por %p170_p2, %p84_p1 }
  0x30   : > { %p1443_p10 = por %p176_p3, %p90_p4  ;;  %p183_p12 = scmp.lt.s32.totalorder %s1270_s20, 3 }
  0x31   : > { %s1698_s26 = scalar_select %p1432_p6, 1, 0 }
  0x32   : > { %s1699_s29 = scalar_select %p1439_p8, 1, 0 }
  0x33   : > { %s1700_s8 = scalar_select %p1443_p10, 1, 0 }
  0x34   : > { %p1448_p13 = pnand %p866_p5, %p183_p12  ;;  %s1276_s30 = smov [#allocation3]  }
  0x35   : > { %s201_s12 = sshll.u32 %s1276_s30, 4  ;;  %s1126_s13 = scalar_lea.hbm %s1417_s22, 2048  ;;  %s1454_s12 = int_to_ptr.vmem [resolvable:$true] %s201_s12 }
  0x36   : > { %s1701_s28 = scalar_select %p1448_p13, 1, 0 }
  0x37   : > { %p1127_p1 = scmp.ne.s32.totalorder %s1417_s22, %s1126_s13  ;;  %s1131_s6 = scalar_lea.hbm %s1687_s3, 4096 }
  0x38   : > { %p1132_p3 = scmp.lt.u32.totalorder %s1417_s22, %s1687_s3  ;;  %p1133_p5 = scmp.lt.u32.totalorder %s1131_s6, %s1126_s13 }
  0x39   : > { %p1129_p4 = pnand %p1127_p1, %p1098_p9  ;;  %p1135_p11 = scmp.lt.u32.totalorder %s1126_s13, %s1417_s22 }
  0x3a   : > { %p1134_p12 = por %p1133_p5, %p1132_p3 }
  0x3b   : > { %p1130_p2 = pneg %p1129_p4 }
  0x3c   : > { %p1136_p0 = por %p1135_p11, %p1134_p12 }
  0x3e   : > { %p1137_p10 = pnand %p1136_p0, %p1130_p2 }
  0x40   : > { %1140 = shalt.err (!%p1137_p10)
}
  0x41   : > { %s1141_s30 = scalar_lea.vmem %s1419_s24, 2048  ;;  %s1277_s14 = smov [#allocation8]  }
  0x42   : > { %p1142_p1 = scmp.ne.s32.totalorder %s1419_s24, %s1141_s30  ;;  %s1146_s23 = sshll.u32 %s1277_s14, 4  ;;  %s1147_s23 = int_to_ptr.vmem [resolvable:$false] %s1146_s23 }
  0x43   : > { %s1148_s5 = scalar_lea.vmem %s1147_s23, 4096  ;;  %p1149_p6 = scmp.lt.s32.totalorder %s1419_s24, %s1147_s23 }
  0x44   : > { %p1144_p4 = pnand %p1142_p1, %p1098_p9  ;;  %p1150_p3 = scmp.lt.s32.totalorder %s1148_s5, %s1141_s30 }
  0x46   : > { %p1145_p8 = pneg %p1144_p4  ;;  %p1151_p5 = por %p1150_p3, %p1149_p6 }
  0x48   : > { %p1152_p11 = pnand %p1151_p5, %p1145_p8 }
  0x4a   : > { %1155 = shalt.err (!%p1152_p11)
}
  0x4b   : > { %s1702_s7 = smov 128   ;;  %s1703_s13 = smov 256  }
  0x4c   : > { %1031 = dma.hbm_to_vmem [thread:$0]  (!%p1373_p7), %s1417_s22, 2048, %s1419_s24, %s1379_s10, %s1703_s13, %s1702_s7, %s1275_s11  }
  0x4d   : > { %p1704_p9 = scmp.eq.s32.totalorder %s1422_s25, 0  ;;  %p1705_p10 = pneg %p1448_p13 }
  0x4e   : > { %s1156_s9 = scalar_lea.hbm %s1684_s0, 4096 }
  0x4f   : > { %p1488_p0 = pnand %p1705_p10, %p1704_p9  ;;  %p1157_p6 = scmp.ne.s32.totalorder %s1684_s0, %s1156_s9 }
  0x50   : > { %p1163_p12 = scmp.lt.u32.totalorder %s1156_s9, %s1684_s0 }
  0x51   : > { %p1158_p8 = pneg %p1488_p0 }
  0x53   : > { %p1159_p2 = pnand %p1158_p8, %p1157_p6 }
  0x55   : > { %p1160_p7 = pneg %p1159_p2 }
  0x57   : > { %p1165_p1 = pnand %p1163_p12, %p1160_p7 }
  0x59   : > { %1168 = shalt.err (!%p1165_p1)
}
  0x5a   : > { %s1169_s22 = scalar_lea.vmem %s1454_s12, 4096  ;;  %p1177_p11 = scmp.lt.s32.totalorder %s1454_s12, %s1454_s12 }
  0x5b   : > { %p1170_p4 = scmp.ne.s32.totalorder %s1454_s12, %s1169_s22  ;;  %p1178_p9 = scmp.lt.s32.totalorder %s1169_s22, %s1169_s22 }
  0x5d   : > { %p1172_p3 = pnand %p1170_p4, %p1158_p8  ;;  %p1179_p10 = por %p1178_p9, %p1177_p11 }
  0x5f   : > { %p1173_p5 = pneg %p1172_p3 }
  0x61   : > { %p1180_p13 = pnand %p1179_p10, %p1173_p5 }
  0x63   : > { %1183 = shalt.err (!%p1180_p13)
}
  0x64   : > { %s1278_s24 = smov 16   ;;  %p1707_p6 = scmp.ne.s32.totalorder %s1701_s28, 0 }
  0x65   : > { %1024 = dma.hbm_to_vmem [thread:$0]  (!%p1488_p0), %s1684_s0, 4096, %s1454_s12, [#allocation4], %s1703_s13, %s1703_s13, %s1278_s24  }
  0x66   : > { %269 = sbr.rel (%p1707_p6) target bundleno = 415 (0x19f), region = 36  ;;  %p1708_p8 = scmp.eq.s32.totalorder (!%p1707_p6), %s1422_s25, 0 }
  0x6d   : > { %1237 = dma.done.wait (%p1708_p8), [#allocation4], 4096   ;;  %p1709_p2 = pmov %p1708_p8 }
  0x6e   : > { %s275_s6 = sand.u32 1, %s1422_s25   ;;  %s1523_s14 = sand.u32 1, %s1254_s16  }
  0x6f   : > { %1239 = vsyncadd (%p1709_p2), [#allocation4], 4294963200  ;;  %s875_s9 = sshll.u32 %s1523_s14, 8  ;;  %s276_s23 = scalar_lea.sflag [#allocation7], %s275_s6 }
  0x70   : > { %s1526_s5 = scalar_lea.vmem [#allocation6], %s875_s9  ;;  %p1710_p13 = scmp.ne.s32.totalorder %s1698_s26, 0 }
  0x72   : > { %1241 = dma.done.wait (%p1710_p13), %s276_s23, 6144  }
  0x73   : > { %1243 = vsyncadd (%p1710_p13), %s276_s23, 4294961152  ;;  %v413_v0 = vld [vmem:[%s1526_s5 + $0x80] sm:$0xff]  ;;  %v414_v1 = vld [vmem:[%s1526_s5 + $0x88] sm:$0xff]  ;;  %p324_p0 = scmp.lt.s32.totalorder %s1262_s18, 1  ;;  %s876_s13 = sshll.u32 %s1523_s14, 7 }
  0x74   : > { %v397_v2 = vld [vmem:[%s1526_s5] sm:$0xff]  ;;  %v963_v3 = vpack.c.bf16 %v414_v1, %v413_v0  ;;  %v398_v4 = vld [vmem:[%s1526_s5 + $0x8] sm:$0xff]  ;;  %v415_v5 = vld [vmem:[%s1526_s5 + $0x90] sm:$0xff]  ;;  %s1576_s10 = scalar_lea.vmem [#allocation8], %s876_s13  ;;  %s1586_s11 = scalar_lea.vmem [#allocation9], %s876_s13 }
  0x75   : > { %v416_v6 = vld [vmem:[%s1526_s5 + $0x98] sm:$0xff]  ;;  %v965_v7 = vpack.c.bf16 %v398_v4, %v397_v2  ;;  %v399_v9 = vld [vmem:[%s1526_s5 + $0x10] sm:$0xff]  ;;  %v417_v11 = vld [vmem:[%s1526_s5 + $0xa0] sm:$0xff]  ;;  %s325_s25 = scalar_select %p324_p0, %s1262_s18, 1 }
  0x76   : > { %v967_v8 = vpack.c.bf16 %v416_v6, %v415_v5  ;;  %v400_v10 = vld [vmem:[%s1526_s5 + $0x18] sm:$0xff]  ;;  %964 = vmatprep.subr.bf16.mxu0 %v963_v3  ;;  %995 = vmatprep.subr.bf16.mxu1 %v963_v3  ;;  %v418_v12 = vld [vmem:[%s1526_s5 + $0xa8] sm:$0xff]  ;;  %v401_v15 = vld [vmem:[%s1526_s5 + $0x20] sm:$0xff]  ;;  %s880_s22 = sshll.u32 %s1262_s18, 7  ;;  %s728_s24 = sshll.u32 %s1586_s11, 4  ;;  %s1633_s24 = int_to_ptr.vmem [resolvable:$true] %s728_s24 }
  0x77   : > { %966 = vmatpush3.bf16.msra.mxu0 %v965_v7  ;;  %1003 = vmatpush3.bf16.msra.mxu1 %v965_v7  ;;  %v969_v13 = vpack.c.bf16 %v400_v10, %v399_v9  ;;  %v971_v14 = vpack.c.bf16 %v418_v12, %v417_v11  ;;  %v402_v16 = vld [vmem:[%s1526_s5 + $0x28] sm:$0xff]  ;;  %v419_v17 = vld [vmem:[%s1526_s5 + $0xb0] sm:$0xff]  ;;  %v420_v18 = vld [vmem:[%s1526_s5 + $0xb8] sm:$0xff]  ;;  %s326_s12 = scalar_lea.vmem %s1686_s2, %s325_s25  ;;  %s1631_s18 = scalar_lea.hbm %s1688_s4, %s880_s22 }
  0x78   : > { %968 = vmatprep.subr.bf16.mxu0 %v967_v8  ;;  %996 = vmatprep.subr.bf16.mxu1 %v967_v8  ;;  %v973_v19 = vpack.c.bf16 %v402_v16, %v401_v15  ;;  %v975_v20 = vpack.c.bf16 %v420_v18, %v419_v17  ;;  %v403_v21 = vld [vmem:[%s1526_s5 + $0x30] sm:$0xff]  ;;  %v404_v22 = vld [vmem:[%s1526_s5 + $0x38] sm:$0xff]  ;;  %v421_v23 = vld [vmem:[%s1526_s5 + $0xc0] sm:$0xff]  ;;  %s713_s6 = scalar_lea.sflag [#allocation5], %s1523_s14  ;;  %s1184_s9 = scalar_lea.vmem %s1633_s24, 2048 }
  0x79   : > { %v422_v24 = vld [vmem:[%s1526_s5 + $0xc8] sm:$0xff]  ;;  %v977_v27 = vpack.c.bf16 %v404_v22, %v403_v21  ;;  %v405_v29 = vld [vmem:[%s1526_s5 + $0x40] sm:$0xff]  ;;  %v423_v31 = vld [vmem:[%s1526_s5 + $0xd0] sm:$0xff]  ;;  %p1185_p7 = scmp.ne.s32.totalorder %s1633_s24, %s1184_s9  ;;  %p1711_p12 = scmp.ne.s32.totalorder %s1699_s29, 0 }
  0x7a   : > { %v366_v25 = vld [vmem:[#allocation3 + $0x8] sm:$0xff]  ;;  %v979_v28 = vpack.c.bf16 %v422_v24, %v421_v23  ;;  %v424_v32 = vld [vmem:[%s1526_s5 + $0xd8] sm:$0xff]  ;;  %v407_v35 = vld [vmem:[%s1526_s5 + $0x50] sm:$0xff]  ;;  %s1279_s23 = smov [#allocation9]  }
  0x7b   : > { %970 = vmatpush3.bf16.msra.mxu0 %v969_v13  ;;  %1004 = vmatpush3.bf16.msra.mxu1 %v969_v13  ;;  %v382_v26 = vld [vmem:[#allocation3 + $0x88] sm:$0xff]  ;;  %v983_v34 = vpack.c.bf16 %v424_v32, %v423_v31  ;;  %v408_v36 = vld [vmem:[%s1526_s5 + $0x58] sm:$0xff]  ;;  %v425_v37 = vld [vmem:[%s1526_s5 + $0xe0] sm:$0xff]  ;;  %p1186_p1 = pnand %p1185_p7, %p1711_p12 }
  0x7c   : > { %972 = vmatprep.subr.bf16.mxu0 %v971_v14  ;;  %997 = vmatprep.subr.bf16.mxu1 %v971_v14  ;;  %v406_v30 = vld [vmem:[%s1526_s5 + $0x48] sm:$0xff]  ;;  %v985_v39 = vpack.c.bf16 %v408_v36, %v407_v35  ;;  %v409_v41 = vld [vmem:[%s1526_s5 + $0x60] sm:$0xff]  ;;  %v427_v43 = vld [vmem:[%s1526_s5 + $0xf0] sm:$0xff] }
  0x7d   : > { %493 = vmatprep.mubr.f32.mxu0 %v366_v25  ;;  %533 = vmatprep.mubr.f32.mxu1 %v382_v26  ;;  %v981_v33 = vpack.c.bf16 %v406_v30, %v405_v29  ;;  %v426_v38 = vld [vmem:[%s1526_s5 + $0xe8] sm:$0xff]  ;;  %v428_v44 = vld [vmem:[%s1526_s5 + $0xf8] sm:$0xff]  ;;  %v411_v47 = vld [vmem:[%s1526_s5 + $0x70] sm:$0xff]  ;;  %p1187_p4 = pneg %p1186_p1 }
  0x7e   : > { %v987_v40 = vpack.c.bf16 %v426_v38, %v425_v37  ;;  %v410_v42 = vld [vmem:[%s1526_s5 + $0x68] sm:$0xff]  ;;  %v991_v46 = vpack.c.bf16 %v428_v44, %v427_v43  ;;  %v412_v48 = vld [vmem:[%s1526_s5 + $0x78] sm:$0xff]  ;;  %v365_v50 = vld [vmem:[#allocation3] sm:$0xff]  ;;  %s1188_s5 = sshll.u32 %s1279_s23, 4  ;;  %s1189_s5 = int_to_ptr.vmem [resolvable:$false] %s1188_s5 }
  0x7f   : > { %974 = vmatpush3.bf16.msra.mxu0 %v973_v19  ;;  %1005 = vmatpush3.bf16.msra.mxu1 %v973_v19  ;;  %v989_v45 = vpack.c.bf16 %v410_v42, %v409_v41  ;;  %v993_v49 = vpack.c.bf16 %v412_v48, %v411_v47  ;;  %v381_v51 = vld [vmem:[#allocation3 + $0x80] sm:$0xff]  ;;  %v368_v52 = vld [vmem:[#allocation3 + $0x18] sm:$0xff]  ;;  %v367_v54 = vld [vmem:[#allocation3 + $0x10] sm:$0xff]  ;;  %s1190_s25 = scalar_lea.vmem %s1189_s5, 4096  ;;  %p1191_p3 = scmp.lt.s32.totalorder %s1633_s24, %s1189_s5 }
  0x80   : > { %976 = vmatprep.subr.bf16.mxu0 %v975_v20  ;;  %998 = vmatprep.subr.bf16.mxu1 %v975_v20  ;;  %v384_v53 = vld [vmem:[#allocation3 + $0x98] sm:$0xff]  ;;  %v383_v55 = vld [vmem:[#allocation3 + $0x90] sm:$0xff]  ;;  %v370_v56 = vld [vmem:[#allocation3 + $0x28] sm:$0xff]  ;;  %p1192_p5 = scmp.lt.s32.totalorder %s1190_s25, %s1184_s9 }
  0x81   : > { %v386_v57 = vld [vmem:[#allocation3 + $0xa8] sm:$0xff]  ;;  %v369_v58 = vld [vmem:[#allocation3 + $0x20] sm:$0xff]  ;;  %v372_v60 = vld [vmem:[#allocation3 + $0x38] sm:$0xff] }
  0x82   : > { %v385_v59 = vld [vmem:[#allocation3 + $0xa0] sm:$0xff]  ;;  %v388_v61 = vld [vmem:[#allocation3 + $0xb8] sm:$0xff]  ;;  %v371_v62 = vld [vmem:[#allocation3 + $0x30] sm:$0xff]  ;;  %p1193_p11 = por %p1192_p5, %p1191_p3 }
  0x83   : > { %978 = vmatpush3.bf16.msra.mxu0 %v977_v27  ;;  %1006 = vmatpush3.bf16.msra.mxu1 %v977_v27  ;;  %v387_v63 = vld [vmem:[#allocation3 + $0xb0] sm:$0xff]  ;;  %v374_v0 = vld [vmem:[#allocation3 + $0x48] sm:$0xff]  ;;  %v373_v2 = vld [vmem:[#allocation3 + $0x40] sm:$0xff] }
  0x84   : > { %980 = vmatprep.subr.bf16.mxu0 %v979_v28  ;;  %999 = vmatprep.subr.bf16.mxu1 %v979_v28  ;;  %v390_v1 = vld [vmem:[#allocation3 + $0xc8] sm:$0xff]  ;;  %v389_v3 = vld [vmem:[#allocation3 + $0xc0] sm:$0xff]  ;;  %v376_v4 = vld [vmem:[#allocation3 + $0x58] sm:$0xff]  ;;  %p1194_p9 = pnand %p1193_p11, %p1187_p4 }
  0x85   : > { %v392_v5 = vld [vmem:[#allocation3 + $0xd8] sm:$0xff]  ;;  %v375_v6 = vld [vmem:[#allocation3 + $0x50] sm:$0xff]  ;;  %v378_v8 = vld [vmem:[#allocation3 + $0x68] sm:$0xff] }
  0x86   : > { %v391_v7 = vld [vmem:[#allocation3 + $0xd0] sm:$0xff]  ;;  %v394_v9 = vld [vmem:[#allocation3 + $0xe8] sm:$0xff]  ;;  %v377_v10 = vld [vmem:[#allocation3 + $0x60] sm:$0xff] }
  0x87   : > { %982 = vmatpush3.bf16.msra.mxu0 %v981_v33  ;;  %1007 = vmatpush3.bf16.msra.mxu1 %v981_v33  ;;  %v393_v11 = vld [vmem:[#allocation3 + $0xe0] sm:$0xff]  ;;  %v380_v12 = vld [vmem:[#allocation3 + $0x78] sm:$0xff]  ;;  %v379_v14 = vld [vmem:[#allocation3 + $0x70] sm:$0xff] }
  0x88   : > { %984 = vmatprep.subr.bf16.mxu0 %v983_v34  ;;  %1000 = vmatprep.subr.bf16.mxu1 %v983_v34  ;;  %v396_v13 = vld [vmem:[#allocation3 + $0xf8] sm:$0xff]  ;;  %v395_v15 = vld [vmem:[#allocation3 + $0xf0] sm:$0xff]  ;;  %v1570_v19 = vld [vmem:[%s326_s12] ss:$0 sm:$0xff] }
  0x89   : > { %v664_v27 = vld [vmem:[%s1576_s10] sm:$0xff]  ;;  %v665_v41 = vld [vmem:[%s1576_s10 + $0x8] sm:$0xff] }
  0x8a   : > { %v672_v28 = vld [vmem:[%s1576_s10 + $0x40] sm:$0xff]  ;;  %v673_v42 = vld [vmem:[%s1576_s10 + $0x48] sm:$0xff] }
  0x8b   : > { %986 = vmatpush3.bf16.msra.mxu0 %v985_v39  ;;  %1008 = vmatpush3.bf16.msra.mxu1 %v985_v39 }
  0x8c   : > { %988 = vmatprep.subr.bf16.mxu0 %v987_v40  ;;  %1001 = vmatprep.subr.bf16.mxu1 %v987_v40 }
  0x8f   : > { %990 = vmatpush3.bf16.msra.mxu0 %v989_v45  ;;  %1009 = vmatpush3.bf16.msra.mxu1 %v989_v45 }
  0x90   : > { %992 = vmatprep.subr.bf16.mxu0 %v991_v46  ;;  %1002 = vmatprep.subr.bf16.mxu1 %v991_v46 }
  0x93   : > { %994 = vmatpush3.bf16.msra.mxu0 %v993_v49  ;;  %1010 = vmatpush3.bf16.msra.mxu1 %v993_v49 }
  0x96   : > { %494 = vmatmul.mubr.f32.vlgmr.msra.gmra.mrb[0].mxu0 %v365_v50  ;;  %534 = vmatmul.mubr.f32.vlgmr.msra.gmra.mrb[0].mxu1 %v381_v51 }
  0x97   : > { %498 = vmatprep.mubr.f32.mxu0 %v368_v52  ;;  %538 = vmatprep.mubr.f32.mxu1 %v384_v53 }
  0x9a   : > { %499 = vmatmul.mubr.f32.gmra.mrb[2].mxu0 %v367_v54  ;;  %539 = vmatmul.mubr.f32.gmra.mrb[2].mxu1 %v383_v55  ;;  %v666_v55 = vld [vmem:[%s1576_s10 + $0x10] sm:$0xff] }
  0x9b   : > { %503 = vmatprep.mubr.f32.mxu0 %v370_v56  ;;  %543 = vmatprep.mubr.f32.mxu1 %v386_v57  ;;  %v674_v56 = vld [vmem:[%s1576_s10 + $0x50] sm:$0xff] }
  0x9e   : > { %504 = vmatmul.mubr.f32.gmra.mrb[4].mxu0 %v369_v58  ;;  %544 = vmatmul.mubr.f32.gmra.mrb[4].mxu1 %v385_v59 }
  0x9f   : > { %508 = vmatprep.mubr.f32.mxu0 %v372_v60  ;;  %548 = vmatprep.mubr.f32.mxu1 %v388_v61 }
  0xa2   : > { %509 = vmatmul.mubr.f32.gmra.mrb[6].mxu0 %v371_v62  ;;  %549 = vmatmul.mubr.f32.gmra.mrb[6].mxu1 %v387_v63 }
  0xa3   : > { %513 = vmatprep.mubr.f32.mxu0 %v374_v0  ;;  %553 = vmatprep.mubr.f32.mxu1 %v390_v1 }
  0xa6   : > { %514 = vmatmul.mubr.f32.gmra.mrb[8].mxu0 %v373_v2  ;;  %554 = vmatmul.mubr.f32.gmra.mrb[8].mxu1 %v389_v3 }
  0xa7   : > { %518 = vmatprep.mubr.f32.mxu0 %v376_v4  ;;  %558 = vmatprep.mubr.f32.mxu1 %v392_v5  ;;  %v667_v5 = vld [vmem:[%s1576_s10 + $0x18] sm:$0xff] }
  0xaa   : > { %519 = vmatmul.mubr.f32.gmra.mrb[10].mxu0 %v375_v6  ;;  %559 = vmatmul.mubr.f32.gmra.mrb[10].mxu1 %v391_v7  ;;  %v675_v6 = vld [vmem:[%s1576_s10 + $0x58] sm:$0xff] }
  0xab   : > { %523 = vmatprep.mubr.f32.mxu0 %v378_v8  ;;  %563 = vmatprep.mubr.f32.mxu1 %v394_v9 }
  0xae   : > { %524 = vmatmul.mubr.f32.gmra.mrb[12].mxu0 %v377_v10  ;;  %564 = vmatmul.mubr.f32.gmra.mrb[12].mxu1 %v393_v11 }
  0xaf   : > { %528 = vmatprep.mubr.f32.mxu0 %v380_v12  ;;  %568 = vmatprep.mubr.f32.mxu1 %v396_v13 }
  0xb2   : > { %529 = vmatmul.mubr.f32.gmra.mrb[14].mxu0 %v379_v14  ;;  %569 = vmatmul.mubr.f32.gmra.mrb[14].mxu1 %v395_v15 }
 0x169   : > { %v915_v16 = vpop.f32.mrb[0].mxu0  ;;  %v939_v17 = vpop.f32.mrb[0].mxu1 }
 0x16a   : > { %v916_v18 = vpop.f32.mrb[1].mxu0  ;;  %v940_v20 = vpop.f32.mrb[1].mxu1 }
 0x16b   : > { %v917_v21 = vadd.f32 %v916_v18, %v915_v16  ;;  %v941_v22 = vadd.f32 %v940_v20, %v939_v17  ;;  %v668_v20 = vld [vmem:[%s1576_s10 + $0x20] sm:$0xff] }
 0x16d   : > { %v632_v23 = vadd.f32 %v917_v21, %v1570_v19  ;;  %v640_v24 = vadd.f32 %v941_v22, %v1570_v19  ;;  %v918_v25 = vpop.f32.mrb[2].mxu0  ;;  %v942_v26 = vpop.f32.mrb[2].mxu1  ;;  %v676_v21 = vld [vmem:[%s1576_s10 + $0x60] sm:$0xff] }
 0x16e   : > { %v919_v29 = vpop.f32.mrb[3].mxu0  ;;  %v943_v30 = vpop.f32.mrb[3].mxu1 }
 0x16f   : > { %v648_v31 = vmax.f32 %v632_v23, 0.0  ;;  %v656_v32 = vmax.f32 %v640_v24, 0.0  ;;  %v920_v33 = vadd.f32 %v919_v29, %v918_v25  ;;  %v944_v34 = vadd.f32 %v943_v30, %v942_v26 }
 0x171   : > { %v680_v35 = vadd.f32 %v664_v27, %v648_v31  ;;  %v688_v36 = vadd.f32 %v672_v28, %v656_v32  ;;  %v633_v37 = vadd.f32 %v920_v33, %v1570_v19  ;;  %v641_v38 = vadd.f32 %v944_v34, %v1570_v19  ;;  %v921_v39 = vpop.f32.mrb[4].mxu0  ;;  %v945_v40 = vpop.f32.mrb[4].mxu1  ;;  %v669_v34 = vld [vmem:[%s1576_s10 + $0x28] sm:$0xff] }
 0x172   : > { %v922_v43 = vpop.f32.mrb[5].mxu0  ;;  %v946_v44 = vpop.f32.mrb[5].mxu1 }
 0x173   : > { %696 = vst [vmem:[%s1586_s11] sm:$0xff] %v680_v35  ;;  %704 = vst [vmem:[%s1586_s11 + $0x40] sm:$0xff] %v688_v36  ;;  %v649_v45 = vmax.f32 %v633_v37, 0.0  ;;  %v657_v46 = vmax.f32 %v641_v38, 0.0  ;;  %v923_v47 = vadd.f32 %v922_v43, %v921_v39  ;;  %v947_v48 = vadd.f32 %v946_v44, %v945_v40  ;;  %v677_v35 = vld [vmem:[%s1576_s10 + $0x68] sm:$0xff] }
 0x175   : > { %v681_v49 = vadd.f32 %v665_v41, %v649_v45  ;;  %v689_v50 = vadd.f32 %v673_v42, %v657_v46  ;;  %v634_v51 = vadd.f32 %v923_v47, %v1570_v19  ;;  %v642_v52 = vadd.f32 %v947_v48, %v1570_v19  ;;  %v924_v53 = vpop.f32.mrb[6].mxu0  ;;  %v948_v54 = vpop.f32.mrb[6].mxu1  ;;  %v670_v48 = vld [vmem:[%s1576_s10 + $0x30] sm:$0xff] }
 0x176   : > { %v925_v57 = vpop.f32.mrb[7].mxu0  ;;  %v949_v58 = vpop.f32.mrb[7].mxu1 }
 0x177   : > { %697 = vst [vmem:[%s1586_s11 + $0x8] sm:$0xff] %v681_v49  ;;  %705 = vst [vmem:[%s1586_s11 + $0x48] sm:$0xff] %v689_v50  ;;  %v650_v59 = vmax.f32 %v634_v51, 0.0  ;;  %v658_v60 = vmax.f32 %v642_v52, 0.0  ;;  %v926_v61 = vadd.f32 %v925_v57, %v924_v53  ;;  %v950_v62 = vadd.f32 %v949_v58, %v948_v54  ;;  %v678_v49 = vld [vmem:[%s1576_s10 + $0x70] sm:$0xff] }
 0x179   : > { %v682_v63 = vadd.f32 %v666_v55, %v650_v59  ;;  %v690_v0 = vadd.f32 %v674_v56, %v658_v60  ;;  %v635_v1 = vadd.f32 %v926_v61, %v1570_v19  ;;  %v643_v2 = vadd.f32 %v950_v62, %v1570_v19  ;;  %v927_v3 = vpop.f32.mrb[8].mxu0  ;;  %v951_v4 = vpop.f32.mrb[8].mxu1  ;;  %v671_v60 = vld [vmem:[%s1576_s10 + $0x38] sm:$0xff] }
 0x17a   : > { %v928_v7 = vpop.f32.mrb[9].mxu0  ;;  %v952_v8 = vpop.f32.mrb[9].mxu1  ;;  %v679_v61 = vld [vmem:[%s1576_s10 + $0x78] sm:$0xff] }
 0x17b   : > { %698 = vst [vmem:[%s1586_s11 + $0x10] sm:$0xff] %v682_v63  ;;  %706 = vst [vmem:[%s1586_s11 + $0x50] sm:$0xff] %v690_v0  ;;  %v651_v9 = vmax.f32 %v635_v1, 0.0  ;;  %v659_v10 = vmax.f32 %v643_v2, 0.0  ;;  %v929_v11 = vadd.f32 %v928_v7, %v927_v3  ;;  %v953_v12 = vadd.f32 %v952_v8, %v951_v4 }
 0x17d   : > { %v683_v13 = vadd.f32 %v667_v5, %v651_v9  ;;  %v691_v14 = vadd.f32 %v675_v6, %v659_v10  ;;  %v636_v15 = vadd.f32 %v929_v11, %v1570_v19  ;;  %v644_v16 = vadd.f32 %v953_v12, %v1570_v19  ;;  %v930_v17 = vpop.f32.mrb[10].mxu0  ;;  %v954_v18 = vpop.f32.mrb[10].mxu1 }
 0x17e   : > { %v931_v22 = vpop.f32.mrb[11].mxu0  ;;  %v955_v23 = vpop.f32.mrb[11].mxu1 }
 0x17f   : > { %699 = vst [vmem:[%s1586_s11 + $0x18] sm:$0xff] %v683_v13  ;;  %707 = vst [vmem:[%s1586_s11 + $0x58] sm:$0xff] %v691_v14  ;;  %v652_v24 = vmax.f32 %v636_v15, 0.0  ;;  %v660_v25 = vmax.f32 %v644_v16, 0.0  ;;  %v932_v26 = vadd.f32 %v931_v22, %v930_v17  ;;  %v956_v27 = vadd.f32 %v955_v23, %v954_v18 }
 0x181   : > { %v684_v28 = vadd.f32 %v668_v20, %v652_v24  ;;  %v692_v29 = vadd.f32 %v676_v21, %v660_v25  ;;  %v637_v30 = vadd.f32 %v932_v26, %v1570_v19  ;;  %v645_v31 = vadd.f32 %v956_v27, %v1570_v19  ;;  %v933_v32 = vpop.f32.mrb[12].mxu0  ;;  %v957_v33 = vpop.f32.mrb[12].mxu1 }
 0x182   : > { %v934_v36 = vpop.f32.mrb[13].mxu0  ;;  %v958_v37 = vpop.f32.mrb[13].mxu1 }
 0x183   : > { %700 = vst [vmem:[%s1586_s11 + $0x20] sm:$0xff] %v684_v28  ;;  %708 = vst [vmem:[%s1586_s11 + $0x60] sm:$0xff] %v692_v29  ;;  %v653_v38 = vmax.f32 %v637_v30, 0.0  ;;  %v661_v39 = vmax.f32 %v645_v31, 0.0  ;;  %v935_v40 = vadd.f32 %v934_v36, %v933_v32  ;;  %v959_v41 = vadd.f32 %v958_v37, %v957_v33 }
 0x185   : > { %v685_v42 = vadd.f32 %v669_v34, %v653_v38  ;;  %v693_v43 = vadd.f32 %v677_v35, %v661_v39  ;;  %v638_v44 = vadd.f32 %v935_v40, %v1570_v19  ;;  %v646_v45 = vadd.f32 %v959_v41, %v1570_v19  ;;  %v936_v46 = vpop.f32.mrb[14].mxu0  ;;  %v960_v47 = vpop.f32.mrb[14].mxu1 }
 0x186   : > { %v937_v50 = vpop.f32.mrb[15].mxu0  ;;  %v961_v51 = vpop.f32.mrb[15].mxu1 }
 0x187   : > { %701 = vst [vmem:[%s1586_s11 + $0x28] sm:$0xff] %v685_v42  ;;  %709 = vst [vmem:[%s1586_s11 + $0x68] sm:$0xff] %v693_v43  ;;  %v654_v52 = vmax.f32 %v638_v44, 0.0  ;;  %v662_v53 = vmax.f32 %v646_v45, 0.0  ;;  %v938_v54 = vadd.f32 %v937_v50, %v936_v46  ;;  %v962_v55 = vadd.f32 %v961_v51, %v960_v47 }
 0x189   : > { %v686_v56 = vadd.f32 %v670_v48, %v654_v52  ;;  %v694_v57 = vadd.f32 %v678_v49, %v662_v53  ;;  %v639_v58 = vadd.f32 %v938_v54, %v1570_v19  ;;  %v647_v59 = vadd.f32 %v962_v55, %v1570_v19 }
 0x18b   : > { %702 = vst [vmem:[%s1586_s11 + $0x30] sm:$0xff] %v686_v56  ;;  %710 = vst [vmem:[%s1586_s11 + $0x70] sm:$0xff] %v694_v57  ;;  %v655_v62 = vmax.f32 %v639_v58, 0.0  ;;  %v663_v63 = vmax.f32 %v647_v59, 0.0 }
 0x18d   : > { %v687_v0 = vadd.f32 %v671_v60, %v655_v62  ;;  %v695_v19 = vadd.f32 %v679_v61, %v663_v63 }
 0x18f   : > { %703 = vst [vmem:[%s1586_s11 + $0x38] sm:$0xff] %v687_v0  ;;  %711 = vst [vmem:[%s1586_s11 + $0x78] sm:$0xff] %v695_v19 }
 0x190   : > { %1197 = shalt.err (!%p1194_p9)
}
 0x191   : > { %s1198_s26 = scalar_lea.hbm %s1631_s18, 2048  ;;  %s1202_s13 = scalar_lea.hbm %s1688_s4, 4096 }
 0x192   : > { %p1199_p10 = scmp.ne.s32.totalorder %s1631_s18, %s1198_s26  ;;  %p1203_p2 = scmp.lt.u32.totalorder %s1631_s18, %s1688_s4 }
 0x193   : > { %p1204_p13 = scmp.lt.u32.totalorder %s1202_s13, %s1198_s26  ;;  %p1206_p7 = scmp.lt.u32.totalorder %s1198_s26, %s1631_s18 }
 0x194   : > { %p1200_p6 = pnand %p1199_p10, %p1711_p12 }
 0x195   : > { %p1205_p0 = por %p1204_p13, %p1203_p2 }
 0x196   : > { %p1201_p8 = pneg %p1200_p6 }
 0x197   : > { %p1207_p1 = por %p1206_p7, %p1205_p0 }
 0x199   : > { %p1208_p4 = pnand %p1207_p1, %p1201_p8 }
 0x19b   : > { %1211 = shalt.err (!%p1208_p4)
}
 0x19c   : > { %s1280_s22 = smov 128   ;;  %s1281_s7 = smov 256  }
 0x19d   : > { %s1282_s30 = smov 8  }
 0x19e   : > { %1019 = dma.vmem_to_hbm [thread:$0]  (%p1711_p12), %s1633_s24, 2048, %s1631_s18, %s713_s6, %s1280_s22, %s1281_s7, %s1282_s30  }
 0x19f PF: > { %s743_s9 = sand.u32 1, %s1250_s15   ;;  %p1712_p3 = scmp.ne.s32.totalorder %s1700_s8, 0 }
 0x1a0   : > { %p1713_p5 = scmp.ge.s32.totalorder %s1270_s20, 2  ;;  %s744_s23 = scalar_lea.sflag [#allocation5], %s743_s9 }
 0x1a2   : > { %p1033_p11 = pnand %p1713_p5, %p1712_p3 }
 0x1a4   : > { %1245 = dma.done.wait (!%p1033_p11), %s744_s23, 2048  }
 0x1a5   : > { %1247 = vsyncadd (!%p1033_p11), %s744_s23, 4294965248  ;;  %s21_s20 = sadd.s32 1, %s1270_s20   ;;  %s1714_s15 = smov %s1254_s16 }
 0x1a6   : > { %p18_p9 = scmp.ge.s32.totalorder %s21_s20, 4   ;;  %s1715_s16 = smov %s1258_s17 }
 0x1a7   : > { %s1716_s17 = smov %s1359_s27  ;;  %s1717_s18 = smov %s1266_s19 }
 0x1a8   : > { %s1718_s19 = smov %s1720_s21  ;;  %20 = sbr.rel (!%p18_p9) target bundleno = 7 (0x7), region = 109 }
 0x1af   :  { %749 = vsyncpa [#allocation4], 1 }
 0x1b0   :  { %751 = vsyncpa [#allocation4 + $0x1], 1 }
 0x1b1   :  { %752 = vsyncpa [#allocation7], 1 }
 0x1b2   :  { %754 = vsyncpa [#allocation7 + $0x1], 1 }
 0x1b3   :  { %755 = vsyncpa [#allocation5], 1 }
 0x1b4   :  { %757 = vsyncpa [#allocation5 + $0x1], 1 }

</bundles_post_ra>
